<compile_context>
chip_gen: v7x
topology: tpu7x:2x2x1
jax: 0.10.0
libtpu: 0.0.40
codegen_flags: <defaults>
</compile_context>

<pallas_src>
import functools

import jax
import jax.numpy as jnp
from jax import lax
from jax.experimental import pallas as pl
from jax.experimental.pallas import tpu as pltpu


def _default_vmem_limit_bytes():
    try:
        cap = int(pltpu.get_tpu_info().vmem_capacity_bytes)
    except Exception:
        cap = 64 * 1024 * 1024          # conservative: <= physical on all gens
    return int(min(96 * 1024 * 1024, cap * 3 // 4))


_VMEM_LIMIT_BYTES = _default_vmem_limit_bytes()


def _pick_batch_block(n, c, hw):
    """Images per grid step: amortize per-step overhead, but keep >= 2 grid
    steps when possible (v7x has 2 TensorCores) and stay well inside VMEM."""
    per_img_bytes = 16 * c * hw * 4     # in/out blocks (double-buffered) + temps
    cap = max(1, (8 * 1024 * 1024) // per_img_bytes)
    target = min(cap, max(1, n // 2))
    bn = 1
    for d in range(1, target + 1):
        if n % d == 0:
            bn = d
    return bn


def _tap_masks(h, w):
    """(9, h*w) f32 masks: 1 where tap (dy, dx) reads a real pixel, 0 where it
    would read same-padding zeros (or wrap around in the flat layout)."""
    hw = h * w
    row = (jnp.arange(hw, dtype=jnp.int32) // w)[None, :]
    col = (jnp.arange(hw, dtype=jnp.int32) % w)[None, :]
    masks = []
    for dy in (-1, 0, 1):
        for dx in (-1, 0, 1):
            valid = ((row + dy >= 0) & (row + dy < h) &
                     (col + dx >= 0) & (col + dx < w))
            masks.append(valid)
    return jnp.concatenate(masks, axis=0).astype(jnp.float32)


def _make_kernel(H, W, batch_block, concat_taps):
    HW = H * W

    def kernel(x_ref, w1_ref, b1_ref, w2_ref, b2_ref, m_ref, out_ref):
        # x_ref/out_ref: (Bn, C, H*W)  flat NCHW block (lane dim = H*W)
        # w{1,2}_ref   : (C, 9*C)      lane-dense weight slab, tap-major columns
        # b{1,2}_ref   : (C, 1)
        # m_ref        : (9, H*W) f32  per-tap boundary masks
        C = out_ref.shape[1]
        masks = m_ref[...]
        w1 = w1_ref[...]
        w2 = w2_ref[...]
        b1 = b1_ref[...]
        b2 = b2_ref[...]

        def conv3x3_relu(h, w, bias):
            # h: (C, HW) f32.  Each tap = lane shift (XLU) + boundary mask (VPU).
            taps = []
            for t in range(9):
                dy, dx = t // 3 - 1, t % 3 - 1
                off = dy * W + dx                   # lane offset of tap (dy, dx)
                if off == 0:
                    taps.append(h)                  # centre tap: no shift / mask
                else:
                    rolled = pltpu.roll(h, shift=(-off) % HW, axis=1)
                    taps.append(rolled * masks[t:t + 1])
            if concat_taps:
                # Single MXU push with K = 9*Cin (cast once per conv for bf16).
                patch = jnp.concatenate(taps, axis=0).astype(w.dtype)
                acc = jnp.dot(w, patch, preferred_element_type=jnp.float32)
            else:
                # Large-C fallback: per-tap dots, no (9C, HW) materialization.
                acc = jnp.zeros((C, HW), jnp.float32)
                for t in range(9):
                    acc = acc + jnp.dot(w[:, t * C:(t + 1) * C],
                                        taps[t].astype(w.dtype),
                                        preferred_element_type=jnp.float32)
            return jnp.maximum(acc + bias, 0.0)     # bias + ReLU in f32

        for b in range(batch_block):                # small static unroll
            xb = x_ref[b].astype(jnp.float32)       # (C, HW)
            h1 = conv3x3_relu(xb, w1, b1)
            h2 = conv3x3_relu(h1, w2, b2)
            # Re-read the residual from VMEM instead of keeping xb live across
            # both convs; store is lane-dense (width H*W).
            out_ref[b] = (h2 + x_ref[b].astype(jnp.float32)).astype(out_ref.dtype)

    return kernel


@functools.partial(jax.jit, static_argnames=("compute_dtype", "batch_block"))
def residual_block(x_nchw, w1_oihw, b1, w2_oihw, b2,
                   compute_dtype=jnp.float32, batch_block=None):
    """x_nchw: (N, C, H, W) float32 -> (N, C, H, W) float32.

    compute_dtype: dtype of the MXU operands (use jnp.bfloat16 on v6e/v7x for
    throughput; accumulation / bias / ReLU / residual stay f32 either way).
    """
    N, C, H, W = x_nchw.shape
    HW = H * W

    bn = batch_block if batch_block is not None else _pick_batch_block(N, C, HW)
    assert N % bn == 0, "batch_block must divide N"
    grid_n = N // bn

    # Use the 9-tap concat (big-K matmul) only while the patch fits comfortably.
    concat_taps = 9 * C * HW * 4 <= 4 * 1024 * 1024
    # TODO(synk): for very large C/H/W add a spatial row-tile grid axis (with a
    # 1-row halo) instead of whole images per step, especially on v7x (64 MiB).

    # Free, contiguity-preserving flatten (lane dim = H*W, no NCHW transpose).
    x_flat = x_nchw.reshape(N, C, HW)

    # OIHW (Cout, Cin, kh, kw) -> lane-dense (Cout, 9*Cin), column index
    # (kh*3 + kw)*Cin + ci, matching the kernel's tap stacking order.
    w1_2d = jnp.transpose(w1_oihw, (0, 2, 3, 1)).reshape(C, 9 * C).astype(compute_dtype)
    w2_2d = jnp.transpose(w2_oihw, (0, 2, 3, 1)).reshape(C, 9 * C).astype(compute_dtype)
    b1_2d = b1.reshape(C, 1).astype(jnp.float32)
    b2_2d = b2.reshape(C, 1).astype(jnp.float32)
    masks = _tap_masks(H, W)                                     # (9, HW) f32

    kernel = _make_kernel(H, W, bn, concat_taps)

    out_flat = pl.pallas_call(
        kernel,
        out_shape=jax.ShapeDtypeStruct((N, C, HW), x_nchw.dtype),
        grid_spec=pltpu.PrefetchScalarGridSpec(
            num_scalar_prefetch=0,
            grid=(grid_n,),
            in_specs=[
                pl.BlockSpec((bn, C, HW), lambda n: (n, 0, 0)),
                pl.BlockSpec((C, 9 * C), lambda n: (0, 0)),
                pl.BlockSpec((C, 1), lambda n: (0, 0)),
                pl.BlockSpec((C, 9 * C), lambda n: (0, 0)),
                pl.BlockSpec((C, 1), lambda n: (0, 0)),
                pl.BlockSpec((9, HW), lambda n: (0, 0)),
            ],
            out_specs=pl.BlockSpec((bn, C, HW), lambda n: (n, 0, 0)),
        ),
        compiler_params=pltpu.CompilerParams(
            dimension_semantics=("parallel",),
            vmem_limit_bytes=_VMEM_LIMIT_BYTES,
        ),
    )(x_flat, w1_2d, b1_2d, w2_2d, b2_2d, masks)

    return out_flat.reshape(N, C, H, W)


def _reference(x, w1, b1, w2, b2):
    """Pure-JAX reference matching the PyTorch forward (NCHW / OIHW)."""
    dn = ("NCHW", "OIHW", "NCHW")
    out = lax.conv_general_dilated(x, w1, (1, 1), ((1, 1), (1, 1)),
                                   dimension_numbers=dn)
    out = jax.nn.relu(out + b1[None, :, None, None])
    out = lax.conv_general_dilated(out, w2, (1, 1), ((1, 1), (1, 1)),
                                   dimension_numbers=dn)
    out = jax.nn.relu(out + b2[None, :, None, None])
    return out + x


if __name__ == "__main__":
    key = jax.random.PRNGKey(0)
    N, C, H, W = 2, 4, 16, 16

    k_x, k_w1, k_b1, k_w2, k_b2 = jax.random.split(key, 5)
    fan_in = C * 3 * 3
    bound = 1.0 / (fan_in ** 0.5)          # PyTorch-style uniform(-bound, bound)
    x = jax.random.normal(k_x, (N, C, H, W), jnp.float32)
    w1 = jax.random.uniform(k_w1, (C, C, 3, 3), jnp.float32, -bound, bound)
    b1 = jax.random.uniform(k_b1, (C,), jnp.float32, -bound, bound)
    w2 = jax.random.uniform(k_w2, (C, C, 3, 3), jnp.float32, -bound, bound)
    b2 = jax.random.uniform(k_b2, (C,), jnp.float32, -bound, bound)

    ref = _reference(x, w1, b1, w2, b2)

    # f32 MXU path: strict tolerance.
    out = jax.block_until_ready(residual_block(x, w1, b1, w2, b2))
    assert out.shape == (N, C, H, W)
    assert jnp.allclose(out, ref, atol=1e-4, rtol=1e-4), "f32 mismatch vs reference"

    # bf16 MXU operands (v6e/v7x throughput path): expected precision loss,
    # so a looser tolerance is used here.
    out_bf16 = jax.block_until_ready(
        residual_block(x, w1, b1, w2, b2, compute_dtype=jnp.bfloat16))
    assert jnp.allclose(out_bf16, ref, atol=5e-2, rtol=5e-2), "bf16 mismatch vs reference"

    print("KERNEL_OK")
</pallas_src>

<mosaic_0001>
module attributes {stable_mosaic.version = 11 : i64} {
  func.func @kernel(%arg0: i32, %arg1: memref<1x4x256xf32, #tpu.memory_space<vmem>>, %arg2: memref<4x36xf32, #tpu.memory_space<vmem>>, %arg3: memref<4x1xf32, #tpu.memory_space<vmem>>, %arg4: memref<4x36xf32, #tpu.memory_space<vmem>>, %arg5: memref<4x1xf32, #tpu.memory_space<vmem>>, %arg6: memref<9x256xf32, #tpu.memory_space<vmem>>, %arg7: memref<1x4x256xf32, #tpu.memory_space<vmem>>) attributes {dimension_semantics = [#tpu.dimension_semantics<parallel>], iteration_bounds = array<i64: 2>, scalar_prefetch = 0 : i64, scratch_operands = 0 : i64, tpu.core_type = #tpu.core_type<tc>, window_params = [{transform_indices = @transform_0, window_bounds = array<i64: 1, 4, 256>}, {pipeline_mode = #tpu.pipeline_mode<synchronous>, transform_indices = @transform_1, window_bounds = array<i64: 4, 36>}, {pipeline_mode = #tpu.pipeline_mode<synchronous>, transform_indices = @transform_2, window_bounds = array<i64: 4, 1>}, {pipeline_mode = #tpu.pipeline_mode<synchronous>, transform_indices = @transform_3, window_bounds = array<i64: 4, 36>}, {pipeline_mode = #tpu.pipeline_mode<synchronous>, transform_indices = @transform_4, window_bounds = array<i64: 4, 1>}, {pipeline_mode = #tpu.pipeline_mode<synchronous>, transform_indices = @transform_5, window_bounds = array<i64: 9, 256>}, {transform_indices = @transform_6, window_bounds = array<i64: 1, 4, 256>}]} {
    %c0 = arith.constant 0 : index
    %c0_0 = arith.constant 0 : index
    %0 = vector.load %arg6[%c0, %c0_0] : memref<9x256xf32, #tpu.memory_space<vmem>>, vector<9x256xf32>
    %c0_1 = arith.constant 0 : index
    %c0_2 = arith.constant 0 : index
    %1 = vector.load %arg2[%c0_1, %c0_2] : memref<4x36xf32, #tpu.memory_space<vmem>>, vector<4x36xf32>
    %c0_3 = arith.constant 0 : index
    %c0_4 = arith.constant 0 : index
    %2 = vector.load %arg4[%c0_3, %c0_4] : memref<4x36xf32, #tpu.memory_space<vmem>>, vector<4x36xf32>
    %c0_5 = arith.constant 0 : index
    %c0_6 = arith.constant 0 : index
    %3 = vector.load %arg3[%c0_5, %c0_6] : memref<4x1xf32, #tpu.memory_space<vmem>>, vector<4x1xf32>
    %c0_7 = arith.constant 0 : index
    %c0_8 = arith.constant 0 : index
    %4 = vector.load %arg5[%c0_7, %c0_8] : memref<4x1xf32, #tpu.memory_space<vmem>>, vector<4x1xf32>
    %c0_9 = arith.constant 0 : index
    %c0_10 = arith.constant 0 : index
    %c0_11 = arith.constant 0 : index
    %5 = vector.load %arg1[%c0_9, %c0_10, %c0_11] : memref<1x4x256xf32, #tpu.memory_space<vmem>>, vector<1x4x256xf32>
    %6 = vector.shape_cast %5 : vector<1x4x256xf32> to vector<4x256xf32>
    %c17_i32 = arith.constant 17 : i32
    %7 = tpu.dynamic_rotate %6 by %c17_i32 dim 1 : vector<4x256xf32>, i32 -> vector<4x256xf32>
    %8 = vector.extract_strided_slice %0 {offsets = [0, 0], sizes = [1, 256], strides = [1, 1]} : vector<9x256xf32> to vector<1x256xf32>
    %9 = vector.broadcast %8 : vector<1x256xf32> to vector<4x256xf32>
    %10 = arith.mulf %7, %9 : vector<4x256xf32>
    %c16_i32 = arith.constant 16 : i32
    %11 = tpu.dynamic_rotate %6 by %c16_i32 dim 1 : vector<4x256xf32>, i32 -> vector<4x256xf32>
    %12 = vector.extract_strided_slice %0 {offsets = [1, 0], sizes = [1, 256], strides = [1, 1]} : vector<9x256xf32> to vector<1x256xf32>
    %13 = vector.broadcast %12 : vector<1x256xf32> to vector<4x256xf32>
    %14 = arith.mulf %11, %13 : vector<4x256xf32>
    %c15_i32 = arith.constant 15 : i32
    %15 = tpu.dynamic_rotate %6 by %c15_i32 dim 1 : vector<4x256xf32>, i32 -> vector<4x256xf32>
    %16 = vector.extract_strided_slice %0 {offsets = [2, 0], sizes = [1, 256], strides = [1, 1]} : vector<9x256xf32> to vector<1x256xf32>
    %17 = vector.broadcast %16 : vector<1x256xf32> to vector<4x256xf32>
    %18 = arith.mulf %15, %17 : vector<4x256xf32>
    %c1_i32 = arith.constant 1 : i32
    %19 = tpu.dynamic_rotate %6 by %c1_i32 dim 1 : vector<4x256xf32>, i32 -> vector<4x256xf32>
    %20 = vector.extract_strided_slice %0 {offsets = [3, 0], sizes = [1, 256], strides = [1, 1]} : vector<9x256xf32> to vector<1x256xf32>
    %21 = vector.broadcast %20 : vector<1x256xf32> to vector<4x256xf32>
    %22 = arith.mulf %19, %21 : vector<4x256xf32>
    %c255_i32 = arith.constant 255 : i32
    %23 = tpu.dynamic_rotate %6 by %c255_i32 dim 1 : vector<4x256xf32>, i32 -> vector<4x256xf32>
    %24 = vector.extract_strided_slice %0 {offsets = [5, 0], sizes = [1, 256], strides = [1, 1]} : vector<9x256xf32> to vector<1x256xf32>
    %25 = vector.broadcast %24 : vector<1x256xf32> to vector<4x256xf32>
    %26 = arith.mulf %23, %25 : vector<4x256xf32>
    %c241_i32 = arith.constant 241 : i32
    %27 = tpu.dynamic_rotate %6 by %c241_i32 dim 1 : vector<4x256xf32>, i32 -> vector<4x256xf32>
    %28 = vector.extract_strided_slice %0 {offsets = [6, 0], sizes = [1, 256], strides = [1, 1]} : vector<9x256xf32> to vector<1x256xf32>
    %29 = vector.broadcast %28 : vector<1x256xf32> to vector<4x256xf32>
    %30 = arith.mulf %27, %29 : vector<4x256xf32>
    %c240_i32 = arith.constant 240 : i32
    %31 = tpu.dynamic_rotate %6 by %c240_i32 dim 1 : vector<4x256xf32>, i32 -> vector<4x256xf32>
    %32 = vector.extract_strided_slice %0 {offsets = [7, 0], sizes = [1, 256], strides = [1, 1]} : vector<9x256xf32> to vector<1x256xf32>
    %33 = vector.broadcast %32 : vector<1x256xf32> to vector<4x256xf32>
    %34 = arith.mulf %31, %33 : vector<4x256xf32>
    %c239_i32 = arith.constant 239 : i32
    %35 = tpu.dynamic_rotate %6 by %c239_i32 dim 1 : vector<4x256xf32>, i32 -> vector<4x256xf32>
    %36 = vector.extract_strided_slice %0 {offsets = [8, 0], sizes = [1, 256], strides = [1, 1]} : vector<9x256xf32> to vector<1x256xf32>
    %37 = vector.broadcast %36 : vector<1x256xf32> to vector<4x256xf32>
    %38 = arith.mulf %35, %37 : vector<4x256xf32>
    %39 = tpu.concatenate %10, %14, %18, %22, %6, %26, %30, %34, %38 in 0 : vector<4x256xf32>, vector<4x256xf32>, vector<4x256xf32>, vector<4x256xf32>, vector<4x256xf32>, vector<4x256xf32>, vector<4x256xf32>, vector<4x256xf32>, vector<4x256xf32> -> vector<36x256xf32>
    %cst = arith.constant dense<0.000000e+00> : vector<4x256xf32>
    %40 = tpu.matmul %1, %39, %cst {dimension_numbers = #tpu.dot_dimension_numbers<[1], [0], [0], [1], [0, 0, 1, 1], [], []>} : vector<4x36xf32>, vector<36x256xf32>, vector<4x256xf32> -> vector<4x256xf32>
    %41 = vector.broadcast %3 : vector<4x1xf32> to vector<4x256xf32>
    %42 = arith.addf %40, %41 : vector<4x256xf32>
    %cst_12 = arith.constant 0.000000e+00 : f32
    %43 = vector.broadcast %cst_12 : f32 to vector<4x256xf32>
    %44 = arith.maximumf %42, %43 : vector<4x256xf32>
    %c17_i32_13 = arith.constant 17 : i32
    %45 = tpu.dynamic_rotate %44 by %c17_i32_13 dim 1 : vector<4x256xf32>, i32 -> vector<4x256xf32>
    %46 = vector.extract_strided_slice %0 {offsets = [0, 0], sizes = [1, 256], strides = [1, 1]} : vector<9x256xf32> to vector<1x256xf32>
    %47 = vector.broadcast %46 : vector<1x256xf32> to vector<4x256xf32>
    %48 = arith.mulf %45, %47 : vector<4x256xf32>
    %c16_i32_14 = arith.constant 16 : i32
    %49 = tpu.dynamic_rotate %44 by %c16_i32_14 dim 1 : vector<4x256xf32>, i32 -> vector<4x256xf32>
    %50 = vector.extract_strided_slice %0 {offsets = [1, 0], sizes = [1, 256], strides = [1, 1]} : vector<9x256xf32> to vector<1x256xf32>
    %51 = vector.broadcast %50 : vector<1x256xf32> to vector<4x256xf32>
    %52 = arith.mulf %49, %51 : vector<4x256xf32>
    %c15_i32_15 = arith.constant 15 : i32
    %53 = tpu.dynamic_rotate %44 by %c15_i32_15 dim 1 : vector<4x256xf32>, i32 -> vector<4x256xf32>
    %54 = vector.extract_strided_slice %0 {offsets = [2, 0], sizes = [1, 256], strides = [1, 1]} : vector<9x256xf32> to vector<1x256xf32>
    %55 = vector.broadcast %54 : vector<1x256xf32> to vector<4x256xf32>
    %56 = arith.mulf %53, %55 : vector<4x256xf32>
    %c1_i32_16 = arith.constant 1 : i32
    %57 = tpu.dynamic_rotate %44 by %c1_i32_16 dim 1 : vector<4x256xf32>, i32 -> vector<4x256xf32>
    %58 = vector.extract_strided_slice %0 {offsets = [3, 0], sizes = [1, 256], strides = [1, 1]} : vector<9x256xf32> to vector<1x256xf32>
    %59 = vector.broadcast %58 : vector<1x256xf32> to vector<4x256xf32>
    %60 = arith.mulf %57, %59 : vector<4x256xf32>
    %c255_i32_17 = arith.constant 255 : i32
    %61 = tpu.dynamic_rotate %44 by %c255_i32_17 dim 1 : vector<4x256xf32>, i32 -> vector<4x256xf32>
    %62 = vector.extract_strided_slice %0 {offsets = [5, 0], sizes = [1, 256], strides = [1, 1]} : vector<9x256xf32> to vector<1x256xf32>
    %63 = vector.broadcast %62 : vector<1x256xf32> to vector<4x256xf32>
    %64 = arith.mulf %61, %63 : vector<4x256xf32>
    %c241_i32_18 = arith.constant 241 : i32
    %65 = tpu.dynamic_rotate %44 by %c241_i32_18 dim 1 : vector<4x256xf32>, i32 -> vector<4x256xf32>
    %66 = vector.extract_strided_slice %0 {offsets = [6, 0], sizes = [1, 256], strides = [1, 1]} : vector<9x256xf32> to vector<1x256xf32>
    %67 = vector.broadcast %66 : vector<1x256xf32> to vector<4x256xf32>
    %68 = arith.mulf %65, %67 : vector<4x256xf32>
    %c240_i32_19 = arith.constant 240 : i32
    %69 = tpu.dynamic_rotate %44 by %c240_i32_19 dim 1 : vector<4x256xf32>, i32 -> vector<4x256xf32>
    %70 = vector.extract_strided_slice %0 {offsets = [7, 0], sizes = [1, 256], strides = [1, 1]} : vector<9x256xf32> to vector<1x256xf32>
    %71 = vector.broadcast %70 : vector<1x256xf32> to vector<4x256xf32>
    %72 = arith.mulf %69, %71 : vector<4x256xf32>
    %c239_i32_20 = arith.constant 239 : i32
    %73 = tpu.dynamic_rotate %44 by %c239_i32_20 dim 1 : vector<4x256xf32>, i32 -> vector<4x256xf32>
    %74 = vector.extract_strided_slice %0 {offsets = [8, 0], sizes = [1, 256], strides = [1, 1]} : vector<9x256xf32> to vector<1x256xf32>
    %75 = vector.broadcast %74 : vector<1x256xf32> to vector<4x256xf32>
    %76 = arith.mulf %73, %75 : vector<4x256xf32>
    %77 = tpu.concatenate %48, %52, %56, %60, %44, %64, %68, %72, %76 in 0 : vector<4x256xf32>, vector<4x256xf32>, vector<4x256xf32>, vector<4x256xf32>, vector<4x256xf32>, vector<4x256xf32>, vector<4x256xf32>, vector<4x256xf32>, vector<4x256xf32> -> vector<36x256xf32>
    %cst_21 = arith.constant dense<0.000000e+00> : vector<4x256xf32>
    %78 = tpu.matmul %2, %77, %cst_21 {dimension_numbers = #tpu.dot_dimension_numbers<[1], [0], [0], [1], [0, 0, 1, 1], [], []>} : vector<4x36xf32>, vector<36x256xf32>, vector<4x256xf32> -> vector<4x256xf32>
    %79 = vector.broadcast %4 : vector<4x1xf32> to vector<4x256xf32>
    %80 = arith.addf %78, %79 : vector<4x256xf32>
    %cst_22 = arith.constant 0.000000e+00 : f32
    %81 = vector.broadcast %cst_22 : f32 to vector<4x256xf32>
    %82 = arith.maximumf %80, %81 : vector<4x256xf32>
    %c0_23 = arith.constant 0 : index
    %c0_24 = arith.constant 0 : index
    %c0_25 = arith.constant 0 : index
    %83 = vector.load %arg1[%c0_23, %c0_24, %c0_25] : memref<1x4x256xf32, #tpu.memory_space<vmem>>, vector<1x4x256xf32>
    %84 = vector.shape_cast %83 : vector<1x4x256xf32> to vector<4x256xf32>
    %85 = arith.addf %82, %84 : vector<4x256xf32>
    %c0_26 = arith.constant 0 : index
    %c0_27 = arith.constant 0 : index
    %c0_28 = arith.constant 0 : index
    %86 = vector.load %arg7[%c0_26, %c0_27, %c0_28] : memref<1x4x256xf32, #tpu.memory_space<vmem>>, vector<1x4x256xf32>
    %87 = vector.shape_cast %86 : vector<1x4x256xf32> to vector<4x256xf32>
    %88 = vector.shape_cast %85 : vector<4x256xf32> to vector<1x4x256xf32>
    tpu.vector_store %arg7[%c0_26, %c0_27, %c0_28], %88 {strides = array<i32>} : memref<1x4x256xf32, #tpu.memory_space<vmem>>, vector<1x4x256xf32>,
    return
  }
  func.func @transform_0(%arg0: i32) -> (i32, i32, i32) {
    %c0_i32 = arith.constant 0 : i32
    %c0_i32_0 = arith.constant 0 : i32
    %c0_i32_1 = arith.constant 0 : i32
    return %arg0, %c0_i32, %c0_i32_0 : i32, i32, i32
  }
  func.func @transform_1(%arg0: i32) -> (i32, i32) {
    %c0_i32 = arith.constant 0 : i32
    %c0_i32_0 = arith.constant 0 : i32
    %c0_i32_1 = arith.constant 0 : i32
    return %c0_i32, %c0_i32_0 : i32, i32
  }
  func.func @transform_2(%arg0: i32) -> (i32, i32) {
    %c0_i32 = arith.constant 0 : i32
    %c0_i32_0 = arith.constant 0 : i32
    %c0_i32_1 = arith.constant 0 : i32
    return %c0_i32, %c0_i32_0 : i32, i32
  }
  func.func @transform_3(%arg0: i32) -> (i32, i32) {
    %c0_i32 = arith.constant 0 : i32
    %c0_i32_0 = arith.constant 0 : i32
    %c0_i32_1 = arith.constant 0 : i32
    return %c0_i32, %c0_i32_0 : i32, i32
  }
  func.func @transform_4(%arg0: i32) -> (i32, i32) {
    %c0_i32 = arith.constant 0 : i32
    %c0_i32_0 = arith.constant 0 : i32
    %c0_i32_1 = arith.constant 0 : i32
    return %c0_i32, %c0_i32_0 : i32, i32
  }
  func.func @transform_5(%arg0: i32) -> (i32, i32) {
    %c0_i32 = arith.constant 0 : i32
    %c0_i32_0 = arith.constant 0 : i32
    %c0_i32_1 = arith.constant 0 : i32
    return %c0_i32, %c0_i32_0 : i32, i32
  }
  func.func @transform_6(%arg0: i32) -> (i32, i32, i32) {
    %c0_i32 = arith.constant 0 : i32
    %c0_i32_0 = arith.constant 0 : i32
    %c0_i32_1 = arith.constant 0 : i32
    return %arg0, %c0_i32, %c0_i32_0 : i32, i32, i32
  }
}

</mosaic_0001>

<bundles_post_ra>
// kernel: residual_block.1
= control target key start
LH: loop header
LB: loop body
LE: loop exit
PB: predicated region body
PF: predicated region fallthrough
CT: control target
= control target key end

     0   :  { %s878_s21 = smov 0   ;;  %s1193_s0 = inlined_call_operand.vmem [shape: f32[2,4,256], index: 0, kind: input, shape index: {}]   ;;  %s1194_s1 = inlined_call_operand.vmem [shape: f32[4,36], index: 1, kind: input, shape index: {}]   ;;  %s1195_s2 = inlined_call_operand.vmem [shape: f32[4,1], index: 2, kind: input, shape index: {}]   ;;  %s1196_s3 = inlined_call_operand.vmem [shape: f32[4,36], index: 3, kind: input, shape index: {}]   ;;  %s1197_s4 = inlined_call_operand.vmem [shape: f32[4,1], index: 4, kind: input, shape index: {}]   ;;  %s1198_s5 = inlined_call_operand.vmem [shape: f32[9,256], index: 5, kind: input, shape index: {}]   ;;  %s1199_s6 = inlined_call_operand.vmem [shape: f32[2,4,256], index: 6, kind: output, shape index: {}]  }
   0x1 LB: > { %s768_s22 = sadd.s32 4294967295, %s831_s21   ;;  %p772_p0 = scmp.ge.s32.totalorder %s831_s21, 1  ;;  %s831_s21 = sphi %s878_s21, %s16_s21  }
   0x2   : > { %p212_p1 = scmp.lt.s32.totalorder %s831_s21, 3 }
   0x4   : > { %p213_p2 = pnand %p772_p0, %p212_p1 }
   0x5   : > { %p242_p3 = scmp.lt.s32.totalorder (!%p213_p2), %s768_s22, 1  ;;  %s833_s27 = smov (!%p213_p2), 1   ;;  %v839_v2 = vmov (!%p213_p2), 0.0   ;;  %v841_v3 = vmov (!%p213_p2), 0   ;;  %v258_v4 = vld [vmem:[%s1195_s2] sm:$0xf] (!%p213_p2)  ;;  %v268_v5 = vlaneseq (!%p213_p2) }
   0x6   : > { %216 = sbr.rel (%p213_p2) target bundleno = 761 (0x2f9), region = 44  ;;  %s834_s28 = smov (!%p213_p2), 16   ;;  %514 = vmatprep.mubr.f32.mxu0 (!%p213_p2), %v839_v2  ;;  %697 = vmatprep.mubr.f32.mxu1 (!%p213_p2), %v839_v2  ;;  %v943_v11 = vld [vmem:[%s1198_s5] sm:$0xff] (!%p213_p2)  ;;  %v948_v12 = vld [vmem:[%s1198_s5 + $0x8] sm:$0xff] (!%p213_p2)  ;;  %vm426_vm4 = vcmask (!%p213_p2), 1043456   ;;  %vm440_vm9 = vcmask (!%p213_p2), 293888  }
   0x7   : > { %s835_s29 = smov (!%p213_p2), 17   ;;  %s836_s30 = smov (!%p213_p2), 15   ;;  %823 = vset.pattern.permute.xlu0 (!%p213_p2), %v841_v3  ;;  %v935_v6 = vshrl.u32 (!%p213_p2), %v268_v5, 7  ;;  %v937_v7 = vand.u32 (!%p213_p2), 127, %v268_v5 }
   0x8   : > { %s837_s7 = smov (!%p213_p2), 127   ;;  %s838_s8 = smov (!%p213_p2), 112  }
   0x9   : > { %s840_s9 = smov (!%p213_p2), 113   ;;  %s842_s10 = smov (!%p213_p2), 111   ;;  %v326_v10 = vsub.s32 (!%p213_p2), 3, %v935_v6  ;;  %v292_v13 = vsub.s32 (!%p213_p2), 1, %v935_v6  ;;  %vm321_vm0 = vcmp.lt.s32.totalorder (!%p213_p2), %v937_v7, 1  ;;  %v275_v16 = vsub.s32 (!%p213_p2), 0, %v935_v6 }
   0xa   : > { %vm287_vm1 = vcmp.lt.s32.totalorder (!%p213_p2), %v937_v7, 16  ;;  %v309_v19 = vsub.s32 (!%p213_p2), 2, %v935_v6  ;;  %vm270_vm2 = vcmp.lt.s32.totalorder (!%p213_p2), %v937_v7, 17  ;;  %vm304_vm3 = vcmp.lt.s32.totalorder (!%p213_p2), %v937_v7, 15 }
   0xb   : > { %v954_v17 = vrot.slane (!%p213_p2), %v943_v11, %v326_v10  ;;  %v957_v18 = vrot.slane (!%p213_p2), %v948_v12, %v326_v10  ;;  %v966_v22 = vrot.slane (!%p213_p2), %v943_v11, %v292_v13  ;;  %v969_v23 = vrot.slane (!%p213_p2), %v948_v12, %v292_v13 }
   0xc   : > { %v973_v24 = vrot.slane (!%p213_p2), %v943_v11, %v275_v16  ;;  %v976_v25 = vrot.slane (!%p213_p2), %v948_v12, %v275_v16  ;;  %v988_v34 = vrot.slane (!%p213_p2), %v943_v11, %v309_v19  ;;  %v991_v35 = vrot.slane (!%p213_p2), %v948_v12, %v309_v19 }
   0xd   : > { %s1201_s22 = smov (!%p242_p3, %s768_s22), 1  ;;  %v343_v38 = vsub.s32 5, %v935_v6  ;;  %vm338_vm5 = vcmp.lt.s32.totalorder %v937_v7, 127  ;;  %v377_v43 = vsub.s32 7, %v935_v6  ;;  %vm372_vm6 = vcmp.lt.s32.totalorder %v937_v7, 112 }
   0xe   : > { %s787_s23 = sshll.u32 %s1201_s22, 3  ;;  %vm355_vm7 = vcmp.lt.s32.totalorder %v937_v7, 113  ;;  %vm389_vm8 = vcmp.lt.s32.totalorder %v937_v7, 111 }
   0xf   : > { %s246_s26 = scalar_lea.vmem %s1193_s0, %s787_s23  ;;  %v1009_v52 = vrot.slane %v943_v11, %v343_v38  ;;  %v1012_v53 = vrot.slane %v948_v12, %v343_v38  ;;  %v1024_v2 = vrot.slane %v943_v11, %v377_v43  ;;  %v1027_v3 = vrot.slane %v948_v12, %v377_v43 }
  0x10   : > { %v894_v0 = vld [vmem:[%s246_s26] sm:$0xff] }
  0x11   : > { %317 = vrot.lane.b32.xlu1 %v894_v0, %s833_s27  ;;  %283 = vrot.lane.b32.xlu0 %v894_v0, %s834_s28  ;;  %v902_v1 = vcombine.high %v894_v0, %v894_v0 }
  0x15   : > { %264 = vrot.lane.b32.xlu0 %v894_v0, %s835_s29  ;;  %319 = vrot.lane.b32.xlu1 %v902_v1, %s833_s27 }
  0x19   : > { %266 = vrot.lane.b32.xlu1 %v902_v1, %s835_s29  ;;  %285 = vrot.lane.b32.xlu0 %v902_v1, %s834_s28 }
  0x1d   : > { %302 = vrot.lane.b32.xlu1 %v902_v1, %s836_s30  ;;  %300 = vrot.lane.b32.xlu0 %v894_v0, %s836_s30 }
  0x21   : > { %336 = vrot.lane.b32.xlu1 %v902_v1, %s837_s7  ;;  %334 = vrot.lane.b32.xlu0 %v894_v0, %s837_s7 }
  0x25   : > { %370 = vrot.lane.b32.xlu1 %v902_v1, %s838_s8  ;;  %368 = vrot.lane.b32.xlu0 %v894_v0, %s838_s8 }
  0x29   : > { %353 = vrot.lane.b32.xlu1 %v902_v1, %s840_s9  ;;  %351 = vrot.lane.b32.xlu0 %v894_v0, %s840_s9 }
  0x2d   : > { %387 = vrot.lane.b32.xlu1 %v902_v1, %s842_s10  ;;  %385 = vrot.lane.b32.xlu0 %v894_v0, %s842_s10 }
  0x31   : > { %437 = vperm.xlu0 %823, %v258_v4   ;;  %v360_v4 = vsub.s32 6, %v935_v6 }
  0x33   : > { %v1040_v16 = vrot.slane %v943_v11, %v360_v4  ;;  %v1043_v19 = vrot.slane %v948_v12, %v360_v4  ;;  %v1055_v12 = vld [vmem:[%s1198_s5 + $0x18] ss:$0 sm:$0xff] }
  0x83   : > { %v318_v8 = vpop.permute.xlu1 %317  ;;  %v284_v9 = vpop.permute.xlu0 %283 }
  0x87   : > { %v265_v14 = vpop.permute.xlu0 %264  ;;  %v320_v15 = vpop.permute.xlu1 %319 }
  0x88   : > { %v322_v20 = vsel %vm321_vm0, %v318_v8, %v320_v15  ;;  %v323_v21 = vsel %vm321_vm0, %v320_v15, %v318_v8 }
  0x89   : > { %v332_v28 = vmul.f32 %v954_v17, %v323_v21  ;;  %v333_v29 = vmul.f32 %v957_v18, %v322_v20 }
  0x8b   : > { %v267_v26 = vpop.permute.xlu1 %266  ;;  %v286_v27 = vpop.permute.xlu0 %285  ;;  %v410_v44 = vrot.slane %v332_v28, 4  ;;  %v411_v45 = vrot.slane %v333_v29, 4 }
  0x8c   : > { %v288_v30 = vsel %vm287_vm1, %v284_v9, %v286_v27  ;;  %v289_v31 = vsel %vm287_vm1, %v286_v27, %v284_v9  ;;  %v271_v36 = vsel %vm270_vm2, %v265_v14, %v267_v26  ;;  %v272_v37 = vsel %vm270_vm2, %v267_v26, %v265_v14 }
  0x8d   : > { %v298_v32 = vmul.f32 %v966_v22, %v289_v31  ;;  %v299_v33 = vmul.f32 %v969_v23, %v288_v30  ;;  %v281_v48 = vmul.f32 %v973_v24, %v272_v37  ;;  %v282_v49 = vmul.f32 %v976_v25, %v271_v36 }
  0x8f   : > { %v404_v39 = vrot.slane %v298_v32, 4  ;;  %v405_v40 = vrot.slane %v299_v33, 4  ;;  %v303_v41 = vpop.permute.xlu1 %302  ;;  %v301_v42 = vpop.permute.xlu0 %300 }
  0x90   : > { %v305_v46 = vsel %vm304_vm3, %v301_v42, %v303_v41  ;;  %v306_v47 = vsel %vm304_vm3, %v303_v41, %v301_v42  ;;  %v1066_v42 = vld [vmem:[%s1198_s5 + $0x10] ss:$0 sm:$0xff] }
  0x91   : > { %v315_v50 = vmul.f32 %v988_v34, %v306_v47  ;;  %v316_v51 = vmul.f32 %v991_v35, %v305_v46  ;;  %v428_v56 = vsel %vm426_vm4, %v282_v49, %v405_v40  ;;  %v427_v58 = vsel %vm426_vm4, %v281_v48, %v404_v39  ;;  %v256_v48 = vld [vmem:[%s1194_s1] sm:$0xf] }
  0x93   : > { %v337_v54 = vpop.permute.xlu1 %336  ;;  %v335_v55 = vpop.permute.xlu0 %334  ;;  %v430_v57 = vsel %vm426_vm4, %v316_v51, %v411_v45  ;;  %v429_v59 = vsel %vm426_vm4, %v315_v50, %v410_v44 }
  0x94   : > { %v339_v60 = vsel %vm338_vm5, %v335_v55, %v337_v54  ;;  %v340_v61 = vsel %vm338_vm5, %v337_v54, %v335_v55  ;;  %v789_v62 = vpack.c.bf16 %v430_v57, %v428_v56  ;;  %v791_v63 = vpack.c.bf16 %v429_v59, %v427_v58  ;;  %v259_v58 = vld [vmem:[%s1197_s4] sm:$0xf] }
  0x95   : > { %v349_v5 = vmul.f32 %v1009_v52, %v339_v60  ;;  %v350_v8 = vmul.f32 %v1012_v53, %v340_v61 }
  0x96   : > { %790 = vmatprep.subr.bf16.mxu0 %v789_v62 }
  0x97   : > { %v371_v9 = vpop.permute.xlu1 %370  ;;  %792 = vmatpush1.bf16.msra.mxu0 %v791_v63  ;;  %v369_v10 = vpop.permute.xlu0 %368  ;;  %v416_v20 = vrot.slane %v349_v5, 4  ;;  %v417_v21 = vrot.slane %v350_v8, 4 }
  0x98   : > { %v373_v13 = vsel %vm372_vm6, %v369_v10, %v371_v9  ;;  %v374_v14 = vsel %vm372_vm6, %v371_v9, %v369_v10 }
  0x99   : > { %v383_v15 = vmul.f32 %v1024_v2, %v373_v13  ;;  %v384_v6 = vmul.f32 %v1027_v3, %v374_v14  ;;  %v432_v36 = vsel %vm426_vm4, %v902_v1, %v417_v21  ;;  %v431_v39 = vsel %vm426_vm4, %v894_v0, %v416_v20 }
  0x9b   : > { %v354_v26 = vpop.permute.xlu1 %353  ;;  %v352_v27 = vpop.permute.xlu0 %351  ;;  %v422_v30 = vrot.slane %v383_v15, 4  ;;  %v423_v31 = vrot.slane %v384_v6, 4 }
  0x9c   : > { %v356_v28 = vsel %vm355_vm7, %v352_v27, %v354_v26  ;;  %v357_v29 = vsel %vm355_vm7, %v354_v26, %v352_v27 }
  0x9d   : > { %v366_v11 = vmul.f32 %v1040_v16, %v356_v28  ;;  %v367_v32 = vmul.f32 %v1043_v19, %v357_v29 }
  0x9f   : > { %v388_v33 = vpop.permute.xlu1 %387  ;;  %v434_v37 = vsel %vm426_vm4, %v367_v32, %v423_v31  ;;  %v386_v38 = vpop.permute.xlu0 %385  ;;  %v433_v40 = vsel %vm426_vm4, %v366_v11, %v422_v30 }
  0xa0   : > { %v793_v41 = vpack.c.bf16 %v434_v37, %v432_v36  ;;  %v390_v43 = vsel %vm389_vm8, %v386_v38, %v388_v33  ;;  %v391_v44 = vsel %vm389_vm8, %v388_v33, %v386_v38  ;;  %v795_v45 = vpack.c.bf16 %v433_v40, %v431_v39 }
  0xa1   : > { %v401_v46 = vmul.f32 %v1055_v12, %v391_v44  ;;  %v400_v47 = vmul.f32 %v1066_v42, %v390_v43 }
  0xa2   : > { %794 = vmatprep.subr.bf16.mxu0 %v793_v41 }
  0xa3   : > { %796 = vmatpush1.bf16.msra.mxu0 %v795_v45 }
  0xa4   : > { %779 = vmatprep.subr.msk.mxu0 %vm426_vm4, %v401_v46 }
  0xa7   : > { %780 = vmatpush1.msk.msra.mxu0 %vm426_vm4, %v400_v47 }
  0xa8   : > { %781 = vmatmul.mubr.msk.f32.vlgmr.msra.gmra.mrb[0].mxu0 %vm440_vm9, %v256_v48 }
  0xb0   : > { %v438_v49 = vpop.permute.xlu0 %437 }
 0x17b   : > { %v516_v50 = vpop.f32.mrb[0].mxu0 }
 0x17c   : > { %v517_v51 = vadd.f32 %v516_v50, %v438_v49  ;;  %v518_v54 = vpop.f32.mrb[1].mxu0 }
 0x17d   : > { %v519_v56 = vadd.f32 %v518_v54, %v438_v49 }
 0x17e   : > { %v1080_v55 = vmax.f32 %v517_v51, 0.0 }
 0x17f   : > { %v1086_v57 = vmax.f32 %v519_v56, 0.0 }
 0x180   : > { %547 = vrot.lane.b32.xlu0 %v1080_v55, %s833_s27  ;;  %531 = vrot.lane.b32.xlu1 %v1080_v55, %s834_s28 }
 0x184   : > { %523 = vrot.lane.b32.xlu0 %v1080_v55, %s835_s29  ;;  %533 = vrot.lane.b32.xlu1 %v1086_v57, %s834_s28 }
 0x188   : > { %539 = vrot.lane.b32.xlu0 %v1080_v55, %s836_s30  ;;  %549 = vrot.lane.b32.xlu1 %v1086_v57, %s833_s27 }
 0x18c   : > { %555 = vrot.lane.b32.xlu0 %v1080_v55, %s837_s7  ;;  %525 = vrot.lane.b32.xlu1 %v1086_v57, %s835_s29 }
 0x190   : > { %571 = vrot.lane.b32.xlu0 %v1080_v55, %s838_s8  ;;  %541 = vrot.lane.b32.xlu1 %v1086_v57, %s836_s30 }
 0x194   : > { %563 = vrot.lane.b32.xlu0 %v1080_v55, %s840_s9  ;;  %557 = vrot.lane.b32.xlu1 %v1086_v57, %s837_s7 }
 0x198   : > { %579 = vrot.lane.b32.xlu0 %v1080_v55, %s842_s10  ;;  %573 = vrot.lane.b32.xlu1 %v1086_v57, %s838_s8  ;;  %s251_s8 = scalar_lea.vmem %s1199_s6, %s787_s23 }
 0x19c   : > { %621 = vperm.xlu0 %823, %v259_v58   ;;  %565 = vrot.lane.b32.xlu1 %v1086_v57, %s840_s9 }
 0x1a0   : > { %581 = vrot.lane.b32.xlu1 %v1086_v57, %s842_s10 }
 0x1f2   : > { %v548_v59 = vpop.permute.xlu0 %547  ;;  %v532_v60 = vpop.permute.xlu1 %531 }
 0x1f6   : > { %v524_v61 = vpop.permute.xlu0 %523  ;;  %v534_v62 = vpop.permute.xlu1 %533 }
 0x1f7   : > { %v535_v5 = vsel %vm287_vm1, %v532_v60, %v534_v62  ;;  %v536_v8 = vsel %vm287_vm1, %v534_v62, %v532_v60 }
 0x1f8   : > { %v537_v14 = vmul.f32 %v536_v8, %v966_v22  ;;  %v538_v15 = vmul.f32 %v535_v5, %v969_v23 }
 0x1fa   : > { %v540_v63 = vpop.permute.xlu0 %539  ;;  %v550_v4 = vpop.permute.xlu1 %549  ;;  %v589_v31 = vrot.slane %v537_v14, 4  ;;  %v590_v22 = vrot.slane %v538_v15, 4 }
 0x1fb   : > { %v551_v9 = vsel %vm321_vm0, %v548_v59, %v550_v4  ;;  %v552_v10 = vsel %vm321_vm0, %v550_v4, %v548_v59 }
 0x1fc   : > { %v553_v21 = vmul.f32 %v552_v10, %v954_v17  ;;  %v554_v26 = vmul.f32 %v551_v9, %v957_v18 }
 0x1fe   : > { %v526_v13 = vpop.permute.xlu1 %525  ;;  %v556_v27 = vpop.permute.xlu0 %555  ;;  %v595_v32 = vrot.slane %v553_v21, 4  ;;  %v596_v33 = vrot.slane %v554_v26, 4 }
 0x1ff   : > { %v527_v6 = vsel %vm270_vm2, %v524_v61, %v526_v13  ;;  %v528_v20 = vsel %vm270_vm2, %v526_v13, %v524_v61 }
 0x200   : > { %v529_v28 = vmul.f32 %v528_v20, %v973_v24  ;;  %v530_v29 = vmul.f32 %v527_v6, %v976_v25 }
 0x202   : > { %v542_v30 = vpop.permute.xlu1 %541  ;;  %v572_v36 = vpop.permute.xlu0 %571  ;;  %v612_v24 = vsel %vm426_vm4, %v530_v29, %v590_v22  ;;  %v611_v38 = vsel %vm426_vm4, %v529_v28, %v589_v31 }
 0x203   : > { %v543_v23 = vsel %vm304_vm3, %v540_v63, %v542_v30  ;;  %v544_v11 = vsel %vm304_vm3, %v542_v30, %v540_v63 }
 0x204   : > { %v545_v17 = vmul.f32 %v544_v11, %v988_v34  ;;  %v546_v18 = vmul.f32 %v543_v23, %v991_v35 }
 0x206   : > { %v558_v37 = vpop.permute.xlu1 %557  ;;  %v614_v25 = vsel %vm426_vm4, %v546_v18, %v596_v33  ;;  %v613_v39 = vsel %vm426_vm4, %v545_v17, %v595_v32  ;;  %v564_v48 = vpop.permute.xlu0 %563 }
 0x207   : > { %v559_v40 = vsel %vm338_vm5, %v556_v27, %v558_v37  ;;  %v560_v41 = vsel %vm338_vm5, %v558_v37, %v556_v27  ;;  %v797_v43 = vpack.c.bf16 %v614_v25, %v612_v24  ;;  %v799_v34 = vpack.c.bf16 %v613_v39, %v611_v38 }
 0x208   : > { %v561_v35 = vmul.f32 %v559_v40, %v1009_v52  ;;  %v562_v44 = vmul.f32 %v560_v41, %v1012_v53 }
 0x209   : > { %798 = vmatprep.subr.bf16.mxu1 %v797_v43 }
 0x20a   : > { %800 = vmatpush1.bf16.msra.mxu1 %v799_v34  ;;  %v574_v45 = vpop.permute.xlu1 %573  ;;  %v601_v51 = vrot.slane %v561_v35, 4  ;;  %v602_v54 = vrot.slane %v562_v44, 4  ;;  %v580_v62 = vpop.permute.xlu0 %579 }
 0x20b   : > { %v575_v46 = vsel %vm372_vm6, %v572_v36, %v574_v45  ;;  %v576_v47 = vsel %vm372_vm6, %v574_v45, %v572_v36 }
 0x20c   : > { %v577_v49 = vmul.f32 %v575_v46, %v1024_v2  ;;  %v578_v50 = vmul.f32 %v576_v47, %v1027_v3  ;;  %v616_v2 = vsel %vm426_vm4, %v1086_v57, %v602_v54  ;;  %v615_v4 = vsel %vm426_vm4, %v1080_v55, %v601_v51  ;;  %v257_v55 = vld [vmem:[%s1196_s3] sm:$0xf] }
 0x20e   : > { %v566_v56 = vpop.permute.xlu1 %565  ;;  %v607_v58 = vrot.slane %v577_v49, 4  ;;  %v608_v59 = vrot.slane %v578_v50, 4 }
 0x20f   : > { %v567_v52 = vsel %vm355_vm7, %v564_v48, %v566_v56  ;;  %v568_v53 = vsel %vm355_vm7, %v566_v56, %v564_v48 }
 0x210   : > { %v569_v60 = vmul.f32 %v567_v52, %v1040_v16  ;;  %v570_v61 = vmul.f32 %v568_v53, %v1043_v19 }
 0x212   : > { %v582_v63 = vpop.permute.xlu1 %581  ;;  %v618_v3 = vsel %vm426_vm4, %v570_v61, %v608_v59  ;;  %v617_v5 = vsel %vm426_vm4, %v569_v60, %v607_v58 }
 0x213   : > { %v584_v8 = vsel %vm389_vm8, %v582_v63, %v580_v62  ;;  %v801_v9 = vpack.c.bf16 %v618_v3, %v616_v2  ;;  %v803_v10 = vpack.c.bf16 %v617_v5, %v615_v4  ;;  %v583_v19 = vsel %vm389_vm8, %v580_v62, %v582_v63 }
 0x214   : > { %v586_v16 = vmul.f32 %v1055_v12, %v584_v8  ;;  %v585_v57 = vmul.f32 %v1066_v42, %v583_v19 }
 0x215   : > { %802 = vmatprep.subr.bf16.mxu1 %v801_v9 }
 0x216   : > { %804 = vmatpush1.bf16.msra.mxu1 %v803_v10 }
 0x217   : > { %782 = vmatprep.subr.msk.mxu1 %vm426_vm4, %v586_v16 }
 0x21a   : > { %783 = vmatpush1.msk.msra.mxu1 %vm426_vm4, %v585_v57 }
 0x21b   : > { %784 = vmatmul.mubr.msk.f32.vlgmr.msra.gmra.mrb[0].mxu1 %vm440_vm9, %v257_v55  ;;  %v622_v13 = vpop.permute.xlu0 %621 }
 0x2ee   : > { %v699_v12 = vpop.f32.mrb[0].mxu1 }
 0x2ef   : > { %v700_v14 = vadd.f32 %v699_v12, %v622_v13  ;;  %v701_v7 = vpop.f32.mrb[1].mxu1 }
 0x2f0   : > { %v702_v15 = vadd.f32 %v701_v7, %v622_v13 }
 0x2f1   : > { %v704_v6 = vmax.f32 %v700_v14, 0.0 }
 0x2f2   : > { %v705_v20 = vmax.f32 %v702_v15, 0.0 }
 0x2f3   : > { %v706_v21 = vadd.f32 %v704_v6, %v894_v0 }
 0x2f4   : > { %v707_v26 = vadd.f32 %v705_v20, %v902_v1 }
 0x2f6   : > { %v710_v42 = vcombine.low %v706_v21, %v707_v26 }
 0x2f8   : > { %712 = vst [vmem:[%s251_s8] sm:$0xff] %v710_v42 }
 0x2f9 PF: > { %s16_s21 = sadd.s32 1, %s831_s21  }
 0x2fa   : > { %p13_p4 = scmp.ge.s32.totalorder %s16_s21, 4  }
 0x2fc   :  { %15 = sbr.rel (!%p13_p4) target bundleno = 1 (0x1), region = 74 }

</bundles_post_ra>
